<compile_context>
chip_gen: v7x
topology: tpu7x:2x2x1
jax: 0.10.0
libtpu: 0.0.40
codegen_flags: <defaults>
</compile_context>

<pallas_src>
import functools

import jax
import jax.numpy as jnp
from jax.experimental import pallas as pl
from jax.experimental.pallas import tpu as pltpu


# ----------------------------- Pallas kernels ------------------------------


def _mha_ln_kernel(x_ref, wqkv_ref, bqkv_ref, wo_ref, bo_ref, g_ref, b_ref,
                   o_ref, *, nhead, head_dim, eps):
    """Fused MHA (one batch element) + residual + LayerNorm1.

    wqkv_ref: (3, nhead, D, head_dim)   -- leading q/k/v and head split
    bqkv_ref: (3, nhead, 1, head_dim)
    wo_ref:   (nhead, head_dim, D)
    """
    x = x_ref[0]                                           # (L, D)
    L, D = x.shape
    xh = jnp.broadcast_to(x[None], (nhead, L, D))          # (H, L, D)

    # Batched (head-leading) projections: no lane-dim slicing anywhere.
    q = jnp.einsum("hld,hde->hle", xh, wqkv_ref[0],
                   preferred_element_type=jnp.float32) + bqkv_ref[0]
    k = jnp.einsum("hld,hde->hle", xh, wqkv_ref[1],
                   preferred_element_type=jnp.float32) + bqkv_ref[1]
    v = jnp.einsum("hld,hde->hle", xh, wqkv_ref[2],
                   preferred_element_type=jnp.float32) + bqkv_ref[2]

    scale = 1.0 / (head_dim ** 0.5)
    s = jnp.einsum("hle,hme->hlm", q, k,
                   preferred_element_type=jnp.float32) * scale     # (H, L, L)
    s = s - jnp.max(s, axis=-1, keepdims=True)
    p = jnp.exp(s)
    p = p * pl.reciprocal(jnp.sum(p, axis=-1, keepdims=True), approx=True)

    ctx = jnp.einsum("hlm,hme->hle", p, v,
                     preferred_element_type=jnp.float32)           # (H, L, e)

    # Output projection: per-head matmul then sum over the leading head axis
    # (replaces lane-concatenate + one big matmul; numerically identical).
    outh = jnp.einsum("hle,hed->hld", ctx, wo_ref[...],
                      preferred_element_type=jnp.float32)          # (H, L, D)
    attn_out = jnp.sum(outh, axis=0) + bo_ref[...]                 # (L, D)

    # Fused residual + LayerNorm1 epilogue (saves a full HBM round trip).
    z = x + attn_out
    mean = jnp.mean(z, axis=-1, keepdims=True)
    c = z - mean
    var = jnp.mean(c * c, axis=-1, keepdims=True)
    o_ref[0] = (c * jax.lax.rsqrt(var + eps) * g_ref[...] + b_ref[...]).astype(o_ref.dtype)


def _gate_kernel(x_ref, w1_ref, b1_ref, w2_ref, b2_ref, u_ref, o_ref, *, tau):
    """Gating MLP (Linear -> ReLU -> Linear) + gumbel-softmax (hard=False)."""
    h = jnp.dot(x_ref[...], w1_ref[...], preferred_element_type=jnp.float32) + b1_ref[...]
    h = jnp.maximum(h, 0.0)
    logits = jnp.dot(h, w2_ref[...], preferred_element_type=jnp.float32) + b2_ref[...]
    g = -jnp.log(-jnp.log(u_ref[...] + 1e-9) + 1e-9)
    s = (logits + g) * (1.0 / tau)
    s = s - jnp.max(s, axis=-1, keepdims=True)
    p = jnp.exp(s)
    o_ref[...] = (p * pl.reciprocal(jnp.sum(p, axis=-1, keepdims=True),
                                    approx=True)).astype(o_ref.dtype)
    # TODO(synk): hard=True straight-through (scatter argmax) not implemented;
    # module default is hard=False.


def _moe_ln_kernel(x_ref, cw_ref, w1_ref, b1_ref, w2_ref, b2_ref,
                   gn_ref, bn_ref, o_ref, acc_ref, *, eps):
    """Dense MoE over the expert grid axis + fused residual + LayerNorm2.

    grid = (token tiles, experts); expert axis is the (last) reduction axis.
    Accumulation in an f32 VMEM scratch; output written once at e == E-1.
    """
    e = pl.program_id(1)
    n_e = pl.num_programs(1)

    @pl.when(e == 0)
    def _():
        acc_ref[...] = jnp.zeros_like(acc_ref)

    x = x_ref[...]                                                  # (tT, D)
    h = jnp.dot(x, w1_ref[0], preferred_element_type=jnp.float32) + b1_ref[0]
    h = jnp.maximum(h, 0.0)
    out = jnp.dot(h, w2_ref[0], preferred_element_type=jnp.float32) + b2_ref[0]

    # Select this expert's combine-weight column without a width-1 dynamic
    # lane slice: iota/where + lane reduction (XLU, effectively free).
    cw = cw_ref[...]                                                # (tT, E)
    lane = jax.lax.broadcasted_iota(jnp.int32, cw.shape, 1)
    w = jnp.sum(jnp.where(lane == e, cw, 0.0), axis=1, keepdims=True)

    acc_ref[...] += w * out

    @pl.when(e == n_e - 1)
    def _():
        # Fused residual + LayerNorm2 finalize.
        z = x.astype(jnp.float32) + acc_ref[...]
        mean = jnp.mean(z, axis=-1, keepdims=True)
        c = z - mean
        var = jnp.mean(c * c, axis=-1, keepdims=True)
        o_ref[...] = (c * jax.lax.rsqrt(var + eps) * gn_ref[...] + bn_ref[...]).astype(o_ref.dtype)


# ----------------------------- kernel wrappers ------------------------------


def mha_ln(x, wqkv, bqkv, wo, bo, gamma, beta, *, nhead, eps=1e-5):
    B, L, D = x.shape
    head_dim = D // nhead
    return pl.pallas_call(
        functools.partial(_mha_ln_kernel, nhead=nhead, head_dim=head_dim, eps=eps),
        out_shape=jax.ShapeDtypeStruct((B, L, D), x.dtype),
        grid=(B,),
        in_specs=[
            pl.BlockSpec((1, L, D), lambda b: (b, 0, 0)),
            pl.BlockSpec((3, nhead, D, head_dim), lambda b: (0, 0, 0, 0)),
            pl.BlockSpec((3, nhead, 1, head_dim), lambda b: (0, 0, 0, 0)),
            pl.BlockSpec((nhead, head_dim, D), lambda b: (0, 0, 0)),
            pl.BlockSpec((1, D), lambda b: (0, 0)),
            pl.BlockSpec((1, D), lambda b: (0, 0)),
            pl.BlockSpec((1, D), lambda b: (0, 0)),
        ],
        out_specs=pl.BlockSpec((1, L, D), lambda b: (b, 0, 0)),
        compiler_params=pltpu.CompilerParams(dimension_semantics=("parallel",)),
    )(x, wqkv, bqkv, wo, bo, gamma, beta)


def gating(x_flat, wg1, bg1, wg2, bg2, uniform_noise, *, tau, tile_t):
    T, D = x_flat.shape
    E = wg2.shape[1]
    assert T % tile_t == 0
    return pl.pallas_call(
        functools.partial(_gate_kernel, tau=tau),
        out_shape=jax.ShapeDtypeStruct((T, E), x_flat.dtype),
        grid=(T // tile_t,),
        in_specs=[
            pl.BlockSpec((tile_t, D), lambda i: (i, 0)),
            pl.BlockSpec((D, D), lambda i: (0, 0)),
            pl.BlockSpec((1, D), lambda i: (0, 0)),
            pl.BlockSpec((D, E), lambda i: (0, 0)),
            pl.BlockSpec((1, E), lambda i: (0, 0)),
            pl.BlockSpec((tile_t, E), lambda i: (i, 0)),
        ],
        out_specs=pl.BlockSpec((tile_t, E), lambda i: (i, 0)),
        compiler_params=pltpu.CompilerParams(dimension_semantics=("parallel",)),
    )(x_flat, wg1, bg1, wg2, bg2, uniform_noise)


def moe_ffn_ln(x_flat, combine_w, w1, b1, w2, b2, gamma, beta, *, tile_t, eps=1e-5):
    T, D = x_flat.shape
    E, _, H = w1.shape
    assert T % tile_t == 0
    return pl.pallas_call(
        functools.partial(_moe_ln_kernel, eps=eps),
        out_shape=jax.ShapeDtypeStruct((T, D), x_flat.dtype),
        grid=(T // tile_t, E),                      # token tiles parallel, experts = reduction
        in_specs=[
            pl.BlockSpec((tile_t, D), lambda i, e: (i, 0)),
            pl.BlockSpec((tile_t, E), lambda i, e: (i, 0)),
            pl.BlockSpec((1, D, H), lambda i, e: (e, 0, 0)),
            pl.BlockSpec((1, 1, H), lambda i, e: (e, 0, 0)),
            pl.BlockSpec((1, H, D), lambda i, e: (e, 0, 0)),
            pl.BlockSpec((1, 1, D), lambda i, e: (e, 0, 0)),
            pl.BlockSpec((1, D), lambda i, e: (0, 0)),
            pl.BlockSpec((1, D), lambda i, e: (0, 0)),
        ],
        out_specs=pl.BlockSpec((tile_t, D), lambda i, e: (i, 0)),
        scratch_shapes=[pltpu.VMEM((tile_t, D), jnp.float32)],
        compiler_params=pltpu.CompilerParams(
            dimension_semantics=("parallel", "arbitrary"),
            vmem_limit_bytes=48 << 20,  # tune per generation for real sizes
        ),
    )(x_flat, combine_w, w1, b1, w2, b2, gamma, beta)


# ----------------------------- model assembly ------------------------------


def init_params(key, D, nhead, num_layers, num_experts, hidden):
    head_dim = D // nhead
    layers = []
    scale = 0.05
    for _ in range(num_layers):
        key, *ks = jax.random.split(key, 9)
        layers.append(dict(
            # q/k/v split on LEADING axes (never sliced on the lane dim in-kernel)
            wqkv=scale * jax.random.normal(ks[0], (3, nhead, D, head_dim), jnp.float32),
            bqkv=jnp.zeros((3, nhead, 1, head_dim), jnp.float32),
            wo=scale * jax.random.normal(ks[1], (nhead, head_dim, D), jnp.float32),
            bo=jnp.zeros((1, D), jnp.float32),
            ln1_g=jnp.ones((1, D), jnp.float32),
            ln1_b=jnp.zeros((1, D), jnp.float32),
            ln2_g=jnp.ones((1, D), jnp.float32),
            ln2_b=jnp.zeros((1, D), jnp.float32),
            wg1=scale * jax.random.normal(ks[2], (D, D), jnp.float32),
            bg1=jnp.zeros((1, D), jnp.float32),
            wg2=scale * jax.random.normal(ks[3], (D, num_experts), jnp.float32),
            bg2=jnp.zeros((1, num_experts), jnp.float32),
            we1=scale * jax.random.normal(ks[4], (num_experts, D, hidden), jnp.float32),
            be1=jnp.zeros((num_experts, 1, hidden), jnp.float32),
            we2=scale * jax.random.normal(ks[5], (num_experts, hidden, D), jnp.float32),
            be2=jnp.zeros((num_experts, 1, D), jnp.float32),
        ))
    return layers


def moe_transformer_forward(x, params, noise_keys, *, nhead, num_experts, top_k,
                            tau, tile_t):
    B, L, D = x.shape
    T = B * L
    all_gate_scores = []
    all_expert_masks = []
    for layer_idx, p in enumerate(params):
        # --- fused self-attention + residual + LayerNorm1 ---
        x = mha_ln(x, p["wqkv"], p["bqkv"], p["wo"], p["bo"],
                   p["ln1_g"], p["ln1_b"], nhead=nhead)

        # --- gating (gumbel-softmax), row-tiled ---
        x_flat = x.reshape(T, D)
        u = jax.random.uniform(noise_keys[layer_idx], (T, num_experts), jnp.float32)
        gate_scores = gating(x_flat, p["wg1"], p["bg1"], p["wg2"], p["bg2"], u,
                             tau=tau, tile_t=tile_t)

        # --- top-k routing glue: combine weights identical to the masked loop ---
        _, topk_idx = jax.lax.top_k(gate_scores, top_k)
        expert_mask = jnp.sum(
            jax.nn.one_hot(topk_idx, num_experts, dtype=x.dtype), axis=1)
        combine_w = gate_scores * expert_mask    # raw score at selected experts

        # --- dense MoE expert FFN + fused residual + LayerNorm2 ---
        x_flat = moe_ffn_ln(x_flat, combine_w, p["we1"], p["be1"], p["we2"],
                            p["be2"], p["ln2_g"], p["ln2_b"], tile_t=tile_t)
        x = x_flat.reshape(B, L, D)

        all_gate_scores.append(gate_scores)
        all_expert_masks.append(expert_mask)
    return x, all_gate_scores, all_expert_masks


# ----------------------------- driver ------------------------------


if __name__ == "__main__":
    B, L, D = 2, 8, 32
    nhead = 4
    num_layers = 2
    num_experts = 4
    top_k = 2
    dim_feedforward = 64
    tau = 1.0
    tile_t = 8          # token tile (multiple of 8 for f32); T = B*L = 16

    key = jax.random.PRNGKey(0)
    kx, kp, kn = jax.random.split(key, 3)
    x = jax.random.normal(kx, (B, L, D), jnp.float32)
    params = init_params(kp, D, nhead, num_layers, num_experts, dim_feedforward)
    noise_keys = jax.random.split(kn, num_layers)

    out, gate_scores_list, expert_masks_list = moe_transformer_forward(
        x, params, noise_keys, nhead=nhead, num_experts=num_experts,
        top_k=top_k, tau=tau, tile_t=tile_t)

    out = jax.block_until_ready(out)
    for gs, em in zip(gate_scores_list, expert_masks_list):
        jax.block_until_ready(gs)
        jax.block_until_ready(em)

    assert out.shape == (B, L, D)
    assert all(gs.shape == (B * L, num_experts) for gs in gate_scores_list)
    assert all(em.shape == (B * L, num_experts) for em in expert_masks_list)
    assert len(gate_scores_list) == num_layers and len(expert_masks_list) == num_layers
    print("KERNEL_OK")
</pallas_src>

<mosaic_0001>
module attributes {stable_mosaic.version = 11 : i64} {
  func.func @_mha_ln_kernel(%arg0: i32, %arg1: memref<1x8x32xf32, #tpu.memory_space<vmem>>, %arg2: memref<3x4x32x8xf32, #tpu.memory_space<vmem>>, %arg3: memref<3x4x1x8xf32, #tpu.memory_space<vmem>>, %arg4: memref<4x8x32xf32, #tpu.memory_space<vmem>>, %arg5: memref<1x32xf32, #tpu.memory_space<vmem>>, %arg6: memref<1x32xf32, #tpu.memory_space<vmem>>, %arg7: memref<1x32xf32, #tpu.memory_space<vmem>>, %arg8: memref<1x8x32xf32, #tpu.memory_space<vmem>>) attributes {dimension_semantics = [#tpu.dimension_semantics<parallel>], iteration_bounds = array<i64: 2>, scalar_prefetch = 0 : i64, scratch_operands = 0 : i64, tpu.core_type = #tpu.core_type<tc>, window_params = [{transform_indices = @transform_0, window_bounds = array<i64: 1, 8, 32>}, {pipeline_mode = #tpu.pipeline_mode<synchronous>, transform_indices = @transform_1, window_bounds = array<i64: 3, 4, 32, 8>}, {pipeline_mode = #tpu.pipeline_mode<synchronous>, transform_indices = @transform_2, window_bounds = array<i64: 3, 4, 1, 8>}, {pipeline_mode = #tpu.pipeline_mode<synchronous>, transform_indices = @transform_3, window_bounds = array<i64: 4, 8, 32>}, {pipeline_mode = #tpu.pipeline_mode<synchronous>, transform_indices = @transform_4, window_bounds = array<i64: 1, 32>}, {pipeline_mode = #tpu.pipeline_mode<synchronous>, transform_indices = @transform_5, window_bounds = array<i64: 1, 32>}, {pipeline_mode = #tpu.pipeline_mode<synchronous>, transform_indices = @transform_6, window_bounds = array<i64: 1, 32>}, {transform_indices = @transform_7, window_bounds = array<i64: 1, 8, 32>}]} {
    %c0 = arith.constant 0 : index
    %c0_0 = arith.constant 0 : index
    %c0_1 = arith.constant 0 : index
    %0 = vector.load %arg1[%c0, %c0_0, %c0_1] : memref<1x8x32xf32, #tpu.memory_space<vmem>>, vector<1x8x32xf32>
    %1 = vector.shape_cast %0 : vector<1x8x32xf32> to vector<8x32xf32>
    %2 = vector.shape_cast %1 : vector<8x32xf32> to vector<1x8x32xf32>
    %3 = vector.shape_cast %2 : vector<1x8x32xf32> to vector<1x8x32xf32>
    %4 = vector.broadcast %3 : vector<1x8x32xf32> to vector<4x8x32xf32>
    %c0_2 = arith.constant 0 : index
    %c0_3 = arith.constant 0 : index
    %c0_4 = arith.constant 0 : index
    %c0_5 = arith.constant 0 : index
    %5 = vector.load %arg2[%c0_2, %c0_3, %c0_4, %c0_5] : memref<3x4x32x8xf32, #tpu.memory_space<vmem>>, vector<1x4x32x8xf32>
    %6 = vector.shape_cast %5 : vector<1x4x32x8xf32> to vector<4x32x8xf32>
    "tpu.trace_start"() <{level = 10 : i32, message = "hld,hde->hle"}> : () -> ()
    %cst = arith.constant dense<0.000000e+00> : vector<4x8x8xf32>
    %7 = tpu.matmul %4, %6, %cst {dimension_numbers = #tpu.dot_dimension_numbers<[2], [1], [1], [2], [0, 0, 0, 1, 1, 2], [0], [0]>} : vector<4x8x32xf32>, vector<4x32x8xf32>, vector<4x8x8xf32> -> vector<4x8x8xf32>
    "tpu.trace_stop"() : () -> ()
    %c0_6 = arith.constant 0 : index
    %c0_7 = arith.constant 0 : index
    %c0_8 = arith.constant 0 : index
    %c0_9 = arith.constant 0 : index
    %8 = vector.load %arg3[%c0_6, %c0_7, %c0_8, %c0_9] : memref<3x4x1x8xf32, #tpu.memory_space<vmem>>, vector<1x4x1x8xf32>
    %9 = vector.shape_cast %8 : vector<1x4x1x8xf32> to vector<4x1x8xf32>
    %10 = vector.broadcast %9 : vector<4x1x8xf32> to vector<4x8x8xf32>
    %11 = arith.addf %7, %10 : vector<4x8x8xf32>
    %c1 = arith.constant 1 : index
    %c0_10 = arith.constant 0 : index
    %c0_11 = arith.constant 0 : index
    %c0_12 = arith.constant 0 : index
    %12 = vector.load %arg2[%c1, %c0_10, %c0_11, %c0_12] : memref<3x4x32x8xf32, #tpu.memory_space<vmem>>, vector<1x4x32x8xf32>
    %13 = vector.shape_cast %12 : vector<1x4x32x8xf32> to vector<4x32x8xf32>
    "tpu.trace_start"() <{level = 10 : i32, message = "hld,hde->hle"}> : () -> ()
    %cst_13 = arith.constant dense<0.000000e+00> : vector<4x8x8xf32>
    %14 = tpu.matmul %4, %13, %cst_13 {dimension_numbers = #tpu.dot_dimension_numbers<[2], [1], [1], [2], [0, 0, 0, 1, 1, 2], [0], [0]>} : vector<4x8x32xf32>, vector<4x32x8xf32>, vector<4x8x8xf32> -> vector<4x8x8xf32>
    "tpu.trace_stop"() : () -> ()
    %c1_14 = arith.constant 1 : index
    %c0_15 = arith.constant 0 : index
    %c0_16 = arith.constant 0 : index
    %c0_17 = arith.constant 0 : index
    %15 = vector.load %arg3[%c1_14, %c0_15, %c0_16, %c0_17] : memref<3x4x1x8xf32, #tpu.memory_space<vmem>>, vector<1x4x1x8xf32>
    %16 = vector.shape_cast %15 : vector<1x4x1x8xf32> to vector<4x1x8xf32>
    %17 = vector.broadcast %16 : vector<4x1x8xf32> to vector<4x8x8xf32>
    %18 = arith.addf %14, %17 : vector<4x8x8xf32>
    %c2 = arith.constant 2 : index
    %c0_18 = arith.constant 0 : index
    %c0_19 = arith.constant 0 : index
    %c0_20 = arith.constant 0 : index
    %19 = vector.load %arg2[%c2, %c0_18, %c0_19, %c0_20] : memref<3x4x32x8xf32, #tpu.memory_space<vmem>>, vector<1x4x32x8xf32>
    %20 = vector.shape_cast %19 : vector<1x4x32x8xf32> to vector<4x32x8xf32>
    "tpu.trace_start"() <{level = 10 : i32, message = "hld,hde->hle"}> : () -> ()
    %cst_21 = arith.constant dense<0.000000e+00> : vector<4x8x8xf32>
    %21 = tpu.matmul %4, %20, %cst_21 {dimension_numbers = #tpu.dot_dimension_numbers<[2], [1], [1], [2], [0, 0, 0, 1, 1, 2], [0], [0]>} : vector<4x8x32xf32>, vector<4x32x8xf32>, vector<4x8x8xf32> -> vector<4x8x8xf32>
    "tpu.trace_stop"() : () -> ()
    %c2_22 = arith.constant 2 : index
    %c0_23 = arith.constant 0 : index
    %c0_24 = arith.constant 0 : index
    %c0_25 = arith.constant 0 : index
    %22 = vector.load %arg3[%c2_22, %c0_23, %c0_24, %c0_25] : memref<3x4x1x8xf32, #tpu.memory_space<vmem>>, vector<1x4x1x8xf32>
    %23 = vector.shape_cast %22 : vector<1x4x1x8xf32> to vector<4x1x8xf32>
    %24 = vector.broadcast %23 : vector<4x1x8xf32> to vector<4x8x8xf32>
    %25 = arith.addf %21, %24 : vector<4x8x8xf32>
    "tpu.trace_start"() <{level = 10 : i32, message = "hle,hme->hlm"}> : () -> ()
    %cst_26 = arith.constant dense<0.000000e+00> : vector<4x8x8xf32>
    %26 = tpu.matmul %11, %18, %cst_26 {dimension_numbers = #tpu.dot_dimension_numbers<[2], [2], [1], [1], [0, 0, 0, 1, 1, 1], [0], [0]>} : vector<4x8x8xf32>, vector<4x8x8xf32>, vector<4x8x8xf32> -> vector<4x8x8xf32>
    "tpu.trace_stop"() : () -> ()
    %cst_27 = arith.constant 0.353553385 : f32
    %27 = vector.broadcast %cst_27 : f32 to vector<4x8x8xf32>
    %28 = arith.mulf %26, %27 : vector<4x8x8xf32>
    %cst_28 = arith.constant dense<0xFF800000> : vector<4x8xf32>
    %29 = vector.multi_reduction <maximumf>, %28, %cst_28 [2] : vector<4x8x8xf32> to vector<4x8xf32>
    %30 = vector.shape_cast %29 : vector<4x8xf32> to vector<4x8x1xf32>
    %31 = vector.broadcast %30 : vector<4x8x1xf32> to vector<4x8x8xf32>
    %32 = arith.subf %28, %31 : vector<4x8x8xf32>
    %33 = math.exp %32 : vector<4x8x8xf32>
    %cst_29 = arith.constant dense<0.000000e+00> : vector<4x8xf32>
    %34 = vector.multi_reduction <add>, %33, %cst_29 [2] : vector<4x8x8xf32> to vector<4x8xf32>
    %35 = vector.shape_cast %34 : vector<4x8xf32> to vector<4x8x1xf32>
    %36 = tpu.reciprocal %35 {approx = true} : vector<4x8x1xf32> -> vector<4x8x1xf32>
    %37 = vector.broadcast %36 : vector<4x8x1xf32> to vector<4x8x8xf32>
    %38 = arith.mulf %33, %37 : vector<4x8x8xf32>
    "tpu.trace_start"() <{level = 10 : i32, message = "hlm,hme->hle"}> : () -> ()
    %cst_30 = arith.constant dense<0.000000e+00> : vector<4x8x8xf32>
    %39 = tpu.matmul %38, %25, %cst_30 {dimension_numbers = #tpu.dot_dimension_numbers<[2], [1], [1], [2], [0, 0, 0, 1, 1, 2], [0], [0]>} : vector<4x8x8xf32>, vector<4x8x8xf32>, vector<4x8x8xf32> -> vector<4x8x8xf32>
    "tpu.trace_stop"() : () -> ()
    %c0_31 = arith.constant 0 : index
    %c0_32 = arith.constant 0 : index
    %c0_33 = arith.constant 0 : index
    %40 = vector.load %arg4[%c0_31, %c0_32, %c0_33] : memref<4x8x32xf32, #tpu.memory_space<vmem>>, vector<4x8x32xf32>
    "tpu.trace_start"() <{level = 10 : i32, message = "hle,hed->hld"}> : () -> ()
    %cst_34 = arith.constant dense<0.000000e+00> : vector<4x8x32xf32>
    %41 = tpu.matmul %39, %40, %cst_34 {dimension_numbers = #tpu.dot_dimension_numbers<[2], [1], [1], [2], [0, 0, 0, 1, 1, 2], [0], [0]>} : vector<4x8x8xf32>, vector<4x8x32xf32>, vector<4x8x32xf32> -> vector<4x8x32xf32>
    "tpu.trace_stop"() : () -> ()
    %cst_35 = arith.constant dense<0.000000e+00> : vector<8x32xf32>
    %42 = vector.multi_reduction <add>, %41, %cst_35 [0] : vector<4x8x32xf32> to vector<8x32xf32>
    %c0_36 = arith.constant 0 : index
    %c0_37 = arith.constant 0 : index
    %43 = vector.load %arg5[%c0_36, %c0_37] : memref<1x32xf32, #tpu.memory_space<vmem>>, vector<1x32xf32>
    %44 = vector.broadcast %43 : vector<1x32xf32> to vector<8x32xf32>
    %45 = arith.addf %42, %44 : vector<8x32xf32>
    %46 = arith.addf %1, %45 : vector<8x32xf32>
    %cst_38 = arith.constant dense<0.000000e+00> : vector<8xf32>
    %47 = vector.multi_reduction <add>, %46, %cst_38 [1] : vector<8x32xf32> to vector<8xf32>
    %48 = vector.shape_cast %47 : vector<8xf32> to vector<8x1xf32>
    %cst_39 = arith.constant 3.200000e+01 : f32
    %49 = vector.broadcast %cst_39 : f32 to vector<8x1xf32>
    %50 = arith.divf %48, %49 : vector<8x1xf32>
    %51 = vector.broadcast %50 : vector<8x1xf32> to vector<8x32xf32>
    %52 = arith.subf %46, %51 : vector<8x32xf32>
    %53 = arith.mulf %52, %52 : vector<8x32xf32>
    %cst_40 = arith.constant dense<0.000000e+00> : vector<8xf32>
    %54 = vector.multi_reduction <add>, %53, %cst_40 [1] : vector<8x32xf32> to vector<8xf32>
    %55 = vector.shape_cast %54 : vector<8xf32> to vector<8x1xf32>
    %cst_41 = arith.constant 3.200000e+01 : f32
    %56 = vector.broadcast %cst_41 : f32 to vector<8x1xf32>
    %57 = arith.divf %55, %56 : vector<8x1xf32>
    %cst_42 = arith.constant 9.99999974E-6 : f32
    %58 = vector.broadcast %cst_42 : f32 to vector<8x1xf32>
    %59 = arith.addf %57, %58 : vector<8x1xf32>
    %60 = math.rsqrt %59 : vector<8x1xf32>
    %61 = vector.broadcast %60 : vector<8x1xf32> to vector<8x32xf32>
    %62 = arith.mulf %52, %61 : vector<8x32xf32>
    %c0_43 = arith.constant 0 : index
    %c0_44 = arith.constant 0 : index
    %63 = vector.load %arg6[%c0_43, %c0_44] : memref<1x32xf32, #tpu.memory_space<vmem>>, vector<1x32xf32>
    %64 = vector.broadcast %63 : vector<1x32xf32> to vector<8x32xf32>
    %65 = arith.mulf %62, %64 : vector<8x32xf32>
    %c0_45 = arith.constant 0 : index
    %c0_46 = arith.constant 0 : index
    %66 = vector.load %arg7[%c0_45, %c0_46] : memref<1x32xf32, #tpu.memory_space<vmem>>, vector<1x32xf32>
    %67 = vector.broadcast %66 : vector<1x32xf32> to vector<8x32xf32>
    %68 = arith.addf %65, %67 : vector<8x32xf32>
    %c0_47 = arith.constant 0 : index
    %c0_48 = arith.constant 0 : index
    %c0_49 = arith.constant 0 : index
    %69 = vector.load %arg8[%c0_47, %c0_48, %c0_49] : memref<1x8x32xf32, #tpu.memory_space<vmem>>, vector<1x8x32xf32>
    %70 = vector.shape_cast %69 : vector<1x8x32xf32> to vector<8x32xf32>
    %71 = vector.shape_cast %68 : vector<8x32xf32> to vector<1x8x32xf32>
    tpu.vector_store %arg8[%c0_47, %c0_48, %c0_49], %71 {strides = array<i32>} : memref<1x8x32xf32, #tpu.memory_space<vmem>>, vector<1x8x32xf32>,
    return
  }
  func.func @transform_0(%arg0: i32) -> (i32, i32, i32) {
    %c0_i32 = arith.constant 0 : i32
    %c0_i32_0 = arith.constant 0 : i32
    %c0_i32_1 = arith.constant 0 : i32
    return %arg0, %c0_i32, %c0_i32_0 : i32, i32, i32
  }
  func.func @transform_1(%arg0: i32) -> (i32, i32, i32, i32) {
    %c0_i32 = arith.constant 0 : i32
    %c0_i32_0 = arith.constant 0 : i32
    %c0_i32_1 = arith.constant 0 : i32
    %c0_i32_2 = arith.constant 0 : i32
    %c0_i32_3 = arith.constant 0 : i32
    return %c0_i32, %c0_i32_0, %c0_i32_1, %c0_i32_2 : i32, i32, i32, i32
  }
  func.func @transform_2(%arg0: i32) -> (i32, i32, i32, i32) {
    %c0_i32 = arith.constant 0 : i32
    %c0_i32_0 = arith.constant 0 : i32
    %c0_i32_1 = arith.constant 0 : i32
    %c0_i32_2 = arith.constant 0 : i32
    %c0_i32_3 = arith.constant 0 : i32
    return %c0_i32, %c0_i32_0, %c0_i32_1, %c0_i32_2 : i32, i32, i32, i32
  }
  func.func @transform_3(%arg0: i32) -> (i32, i32, i32) {
    %c0_i32 = arith.constant 0 : i32
    %c0_i32_0 = arith.constant 0 : i32
    %c0_i32_1 = arith.constant 0 : i32
    %c0_i32_2 = arith.constant 0 : i32
    return %c0_i32, %c0_i32_0, %c0_i32_1 : i32, i32, i32
  }
  func.func @transform_4(%arg0: i32) -> (i32, i32) {
    %c0_i32 = arith.constant 0 : i32
    %c0_i32_0 = arith.constant 0 : i32
    %c0_i32_1 = arith.constant 0 : i32
    return %c0_i32, %c0_i32_0 : i32, i32
  }
  func.func @transform_5(%arg0: i32) -> (i32, i32) {
    %c0_i32 = arith.constant 0 : i32
    %c0_i32_0 = arith.constant 0 : i32
    %c0_i32_1 = arith.constant 0 : i32
    return %c0_i32, %c0_i32_0 : i32, i32
  }
  func.func @transform_6(%arg0: i32) -> (i32, i32) {
    %c0_i32 = arith.constant 0 : i32
    %c0_i32_0 = arith.constant 0 : i32
    %c0_i32_1 = arith.constant 0 : i32
    return %c0_i32, %c0_i32_0 : i32, i32
  }
  func.func @transform_7(%arg0: i32) -> (i32, i32, i32) {
    %c0_i32 = arith.constant 0 : i32
    %c0_i32_0 = arith.constant 0 : i32
    %c0_i32_1 = arith.constant 0 : i32
    return %arg0, %c0_i32, %c0_i32_0 : i32, i32, i32
  }
}

</mosaic_0001>

<bundles_post_ra>
// kernel: tpu_custom_call.1
= control target key start
LH: loop header
LB: loop body
LE: loop exit
PB: predicated region body
PF: predicated region fallthrough
CT: control target
= control target key end

     0   :  { %12 = vsyncpa [#allocation3], 0  ;;  %s3371_s0 = inlined_call_operand.vmem [shape: f32[2,8,32], index: 0, kind: input, shape index: {}]   ;;  %s3372_s1 = inlined_call_operand.vmem [shape: f32[3,4,32,8], index: 1, kind: input, shape index: {}]   ;;  %s3373_s2 = inlined_call_operand.vmem [shape: f32[3,4,1,8], index: 2, kind: input, shape index: {}]   ;;  %s3374_s3 = inlined_call_operand.vmem [shape: f32[4,8,32], index: 3, kind: input, shape index: {}]   ;;  %s3375_s4 = inlined_call_operand.vmem [shape: f32[1,32], index: 4, kind: input, shape index: {}]   ;;  %s3376_s5 = inlined_call_operand.vmem [shape: f32[1,32], index: 5, kind: input, shape index: {}]   ;;  %s3377_s6 = inlined_call_operand.vmem [shape: f32[1,32], index: 6, kind: input, shape index: {}]   ;;  %s3378_s7 = inlined_call_operand.hbm [shape: f32[2,8,32], index: 7, kind: output, shape index: {}]  }
   0x1   :  { %14 = vsyncpa [#allocation3 + $0x1], 0  ;;  %s2925_s24 = smov 0   ;;  %s2927_s25 = smov 0  }
   0x2   :  { %s2929_s26 = smov 0   ;;  %s2931_s27 = smov 0  }
   0x3 LB: > { %s2946_s28 = sadd.s32 4294967295, %s2879_s27   ;;  %s2316_s29 = sadd.s32 4294967294, %s2879_s27   ;;  %s2879_s27 = sphi %s2931_s27, %s3384_s27   ;;  %s2875_s26 = sphi %s2929_s26, %s3383_s26   ;;  %s2871_s25 = sphi %s2927_s25, %s3382_s25   ;;  %s2867_s24 = sphi %s2925_s24, %s3381_s24  }
   0x4   : > { %s2950_s30 = sadd.s32 1, %s2879_s27   ;;  %s179_s8 = sadd.s32 1, %s2875_s26 }
   0x5   : > { %s176_s9 = ssub.s32 %s2879_s27, %s2950_s30  ;;  %p189_p0 = scmp.ne.s32.totalorder %s2875_s26, %s2871_s25 }
   0x6   : > { %p177_p1 = scmp.eq.s32.totalorder %s176_s9, 0  ;;  %p190_p2 = scmp.eq.s32.totalorder %s2946_s28, 1 }
   0x7   : > { %p195_p3 = scmp.ne.s32.totalorder %s2871_s25, %s2867_s24  ;;  %p196_p4 = scmp.eq.s32.totalorder %s2316_s29, 1 }
   0x8   : > { %s2961_s10 = scalar_select %p177_p1, %s2875_s26, %s179_s8  }
   0x9   : > { %p2963_p5 = por %p190_p2, %p189_p0  ;;  %p2967_p6 = por %p196_p4, %p195_p3 }
   0xa   : > { %p2319_p7 = scmp.ge.s32.totalorder %s2879_s27, 1  ;;  %p239_p8 = scmp.lt.s32.totalorder %s2879_s27, 3 }
   0xc   : > { %p240_p9 = pnand %p2319_p7, %p239_p8 }
   0xd   : > { %v275_v0 = vld [vmem:[%s3372_s1] sm:$0xff] (!%p240_p9)  ;;  %v276_v1 = vld [vmem:[%s3372_s1 + $0x8] sm:$0xff] (!%p240_p9)  ;;  %v2881_v3 = vmov (!%p240_p9), 0.0|0.0   ;;  %v277_v6 = vld [vmem:[%s3372_s1 + $0x10] sm:$0xff] (!%p240_p9)  ;;  %p270_p10 = scmp.lt.s32.totalorder (!%p240_p9), %s2946_s28, 1  ;;  %vm2882_vm0 = vmmov (!%p240_p9), 0  }
   0xe   : > { %243 = sbr.rel (%p240_p9) target bundleno = 1557 (0x615), region = 48  ;;  %v279_v2 = vld [vmem:[%s3372_s1 + $0x20] sm:$0xff] (!%p240_p9)  ;;  %2685 = vmatprep.subr.bf16.mxu0 (!%p240_p9), %v2881_v3  ;;  %2691 = vmatprep.subr.bf16.mxu1 (!%p240_p9), %v2881_v3  ;;  %v2686_v4 = vpack.c.bf16 (!%p240_p9), %v276_v1, %v275_v0  ;;  %v280_v5 = vld [vmem:[%s3372_s1 + $0x28] sm:$0xff] (!%p240_p9)  ;;  %v278_v7 = vld [vmem:[%s3372_s1 + $0x18] sm:$0xff] (!%p240_p9)  ;;  %v2883_v11 = vmov (!%p240_p9), 0.0   ;;  %vm319_vm1 = vcmask (!%p240_p9), 261120  }
   0xf   : > { %v2692_v8 = vpack.c.bf16 (!%p240_p9), %v280_v5, %v279_v2  ;;  %v281_v9 = vld [vmem:[%s3372_s1 + $0x30] sm:$0xff] (!%p240_p9)  ;;  %v282_v10 = vld [vmem:[%s3372_s1 + $0x38] sm:$0xff] (!%p240_p9)  ;;  %2501 = vmatprep.mubr.msk.f32.mxu0 (!%p240_p9), %vm2882_vm0, %v2883_v11  ;;  %2512 = vmatprep.mubr.msk.f32.mxu1 (!%p240_p9), %vm2882_vm0, %v2883_v11  ;;  %v2689_v12 = vpack.c.bf16 (!%p240_p9), %v278_v7, %v277_v6  ;;  %v283_v14 = vld [vmem:[%s3372_s1 + $0x40] sm:$0xff] (!%p240_p9)  ;;  %vm1255_vm2 = vcmask (!%p240_p9), 64512   ;;  %s267_s22 = sand.u32 (!%p240_p9), 1, %s2871_s25   ;;  %s2406_s14 = sshll.u32 (!%p240_p9), %s2946_s28, 7 }
  0x10   : > { %2687 = vmatpush3.bf16.msra.mxu0 (!%p240_p9), %v2686_v4  ;;  %v2695_v13 = vpack.c.bf16 (!%p240_p9), %v282_v10, %v281_v9  ;;  %v284_v15 = vld [vmem:[%s3372_s1 + $0x48] sm:$0xff] (!%p240_p9)  ;;  %v287_v16 = vld [vmem:[%s3372_s1 + $0x60] sm:$0xff] (!%p240_p9)  ;;  %v285_v21 = vld [vmem:[%s3372_s1 + $0x50] sm:$0xff] (!%p240_p9)  ;;  %s2320_s23 = sshll.u32 (!%p240_p9), %s267_s22, 3  ;;  %s3328_s19 = scalar_lea.hbm (!%p240_p9), %s3378_s7, %s2406_s14 }
  0x11   : > { %2693 = vmatpush3.bf16.msra.mxu1 (!%p240_p9), %v2692_v8  ;;  %2688 = vmatprep.subr.bf16.mxu0 (!%p240_p9), %v2881_v3  ;;  %v288_v17 = vld [vmem:[%s3372_s1 + $0x68] sm:$0xff] (!%p240_p9)  ;;  %v2698_v19 = vpack.c.bf16 (!%p240_p9), %v284_v15, %v283_v14  ;;  %v286_v22 = vld [vmem:[%s3372_s1 + $0x58] sm:$0xff] (!%p240_p9)  ;;  %v289_v23 = vld [vmem:[%s3372_s1 + $0x70] sm:$0xff] (!%p240_p9) }
  0x12   : > { %2694 = vmatprep.subr.bf16.mxu1 (!%p240_p9), %v2881_v3  ;;  %v2704_v20 = vpack.c.bf16 (!%p240_p9), %v288_v17, %v287_v16  ;;  %v290_v24 = vld [vmem:[%s3372_s1 + $0x78] sm:$0xff] (!%p240_p9)  ;;  %v2701_v25 = vpack.c.bf16 (!%p240_p9), %v286_v22, %v285_v21  ;;  %v2330_v27 = vld [vmem:[%s3372_s1 + $0x80] sm:$0xff] (!%p240_p9)  ;;  %v2331_v28 = vld [vmem:[%s3372_s1 + $0x88] sm:$0xff] (!%p240_p9) }
  0x13   : > { %v2707_v26 = vpack.c.bf16 (!%p240_p9), %v290_v24, %v289_v23  ;;  %v2334_v29 = vld [vmem:[%s3372_s1 + $0xa0] sm:$0xff] (!%p240_p9)  ;;  %v2335_v30 = vld [vmem:[%s3372_s1 + $0xa8] sm:$0xff] (!%p240_p9)  ;;  %v2710_v31 = vpack.c.bf16 (!%p240_p9), %v2331_v28, %v2330_v27  ;;  %v2332_v33 = vld [vmem:[%s3372_s1 + $0x90] sm:$0xff] (!%p240_p9) }
  0x14   : > { %2690 = vmatpush3.bf16.msra.mxu0 (!%p240_p9), %v2689_v12  ;;  %v2716_v32 = vpack.c.bf16 (!%p240_p9), %v2335_v30, %v2334_v29  ;;  %v2333_v34 = vld [vmem:[%s3372_s1 + $0x98] sm:$0xff] (!%p240_p9)  ;;  %v2336_v35 = vld [vmem:[%s3372_s1 + $0xb0] sm:$0xff] (!%p240_p9)  ;;  %v2338_v39 = vld [vmem:[%s3372_s1 + $0xc0] sm:$0xff] (!%p240_p9) }
  0x15   : > { %s271_s15 = scalar_select %p270_p10, %s2946_s28, 1  ;;  %2696 = vmatpush3.bf16.msra.mxu1 %v2695_v13  ;;  %2697 = vmatprep.subr.bf16.mxu0 %v2881_v3  ;;  %v2337_v36 = vld [vmem:[%s3372_s1 + $0xb8] sm:$0xff]  ;;  %v2713_v37 = vpack.c.bf16 %v2333_v34, %v2332_v33  ;;  %v2339_v40 = vld [vmem:[%s3372_s1 + $0xc8] sm:$0xff]  ;;  %v2342_v41 = vld [vmem:[%s3372_s1 + $0xe0] sm:$0xff] }
  0x16   : > { %2703 = vmatprep.subr.bf16.mxu1 %v2881_v3  ;;  %v2719_v38 = vpack.c.bf16 %v2337_v36, %v2336_v35  ;;  %v2343_v42 = vld [vmem:[%s3372_s1 + $0xe8] sm:$0xff]  ;;  %v2722_v43 = vpack.c.bf16 %v2339_v40, %v2338_v39  ;;  %v2340_v45 = vld [vmem:[%s3372_s1 + $0xd0] sm:$0xff]  ;;  %v2341_v46 = vld [vmem:[%s3372_s1 + $0xd8] sm:$0xff]  ;;  %s2884_s28 = smov [#allocation2]  }
  0x17   : > { %s2321_s20 = sshll.u32 %s271_s15, 3  ;;  %v2728_v44 = vpack.c.bf16 %v2343_v42, %v2342_v41  ;;  %v2344_v47 = vld [vmem:[%s3372_s1 + $0xf0] sm:$0xff]  ;;  %v2345_v48 = vld [vmem:[%s3372_s1 + $0xf8] sm:$0xff]  ;;  %v2725_v49 = vpack.c.bf16 %v2341_v46, %v2340_v45  ;;  %v2358_v51 = vld [vmem:[%s3372_s1 + $0x100] sm:$0xff]  ;;  %s269_s15 = scalar_lea.vmem [#allocation2], %s2320_s23 }
  0x18   : > { %s273_s13 = scalar_lea.vmem %s3371_s0, %s2321_s20  ;;  %v2731_v50 = vpack.c.bf16 %v2345_v48, %v2344_v47  ;;  %v2359_v52 = vld [vmem:[%s3372_s1 + $0x108] sm:$0xff]  ;;  %v2362_v53 = vld [vmem:[%s3372_s1 + $0x120] sm:$0xff]  ;;  %v2360_v57 = vld [vmem:[%s3372_s1 + $0x110] sm:$0xff]  ;;  %s2257_s16 = sshll.u32 %s269_s15, 4  ;;  %s3330_s16 = int_to_ptr.vmem [resolvable:$true] %s2257_s16 }
  0x19   : > { %v3022_v18 = vld [vmem:[%s273_s13] sm:$0xff]  ;;  %v2363_v54 = vld [vmem:[%s3372_s1 + $0x128] sm:$0xff]  ;;  %v2734_v55 = vpack.c.bf16 %v2359_v52, %v2358_v51  ;;  %v2361_v58 = vld [vmem:[%s3372_s1 + $0x118] sm:$0xff]  ;;  %s2244_s20 = scalar_lea.sflag [#allocation3], %s267_s22  ;;  %s2817_s21 = scalar_lea.vmem %s3330_s16, 128 }
  0x1a   : > { %2502 = vmatmul.mubr.msk.f32.vlgmr.msra.gmra.mrb[0].mxu0 %vm319_vm1, %v3022_v18  ;;  %2513 = vmatmul.mubr.msk.f32.vlgmr.msra.gmra.mrb[0].mxu1 %vm319_vm1, %v3022_v18  ;;  %v2740_v56 = vpack.c.bf16 %v2363_v54, %v2362_v53  ;;  %v2364_v59 = vld [vmem:[%s3372_s1 + $0x130] sm:$0xff]  ;;  %v2737_v60 = vpack.c.bf16 %v2361_v58, %v2360_v57  ;;  %v2365_v61 = vld [vmem:[%s3372_s1 + $0x138] sm:$0xff]  ;;  %v2366_v63 = vld [vmem:[%s3372_s1 + $0x140] sm:$0xff]  ;;  %p2818_p11 = scmp.ne.s32.totalorder %s3330_s16, %s2817_s21  ;;  %s2821_s23 = sshll.u32 %s2884_s28, 4  ;;  %s2822_s23 = int_to_ptr.vmem [resolvable:$false] %s2821_s23 }
  0x1b   : > { %2699 = vmatpush3.bf16.msra.mxu0 %v2698_v19  ;;  %2705 = vmatpush3.bf16.msra.mxu1 %v2704_v20  ;;  %v2743_v62 = vpack.c.bf16 %v2365_v61, %v2364_v59  ;;  %v2367_v0 = vld [vmem:[%s3372_s1 + $0x148] sm:$0xff]  ;;  %v2370_v1 = vld [vmem:[%s3372_s1 + $0x160] sm:$0xff]  ;;  %v2368_v6 = vld [vmem:[%s3372_s1 + $0x150] sm:$0xff]  ;;  %s2823_s29 = scalar_lea.vmem %s2822_s23, 256  ;;  %p2824_p0 = scmp.lt.s32.totalorder %s3330_s16, %s2822_s23 }
  0x1c   : > { %2700 = vmatprep.subr.bf16.mxu0 %v2881_v3  ;;  %2706 = vmatprep.subr.bf16.mxu1 %v2881_v3  ;;  %v2746_v2 = vpack.c.bf16 %v2367_v0, %v2366_v63  ;;  %v2371_v4 = vld [vmem:[%s3372_s1 + $0x168] sm:$0xff]  ;;  %v2369_v7 = vld [vmem:[%s3372_s1 + $0x158] sm:$0xff]  ;;  %v2372_v8 = vld [vmem:[%s3372_s1 + $0x170] sm:$0xff]  ;;  %p2819_p12 = pnand %p2818_p11, %p2963_p5  ;;  %p2825_p1 = scmp.lt.s32.totalorder %s2823_s29, %s2817_s21 }
  0x1d   : > { %2523 = vmatprep.mubr.msk.f32.mxu0 %vm2882_vm0, %v2883_v11  ;;  %2534 = vmatprep.mubr.msk.f32.mxu1 %vm2882_vm0, %v2883_v11  ;;  %v2752_v5 = vpack.c.bf16 %v2371_v4, %v2370_v1  ;;  %v2749_v9 = vpack.c.bf16 %v2369_v7, %v2368_v6  ;;  %v2373_v10 = vld [vmem:[%s3372_s1 + $0x178] sm:$0xff]  ;;  %v2350_v21 = vld [vmem:[%s3373_s2 + $0x4] ss:$0 sm:$0xff]  ;;  %v2351_v22 = vld [vmem:[%s3373_s2 + $0x5] ss:$0 sm:$0xff] }
  0x1e   : > { %v2755_v12 = vpack.c.bf16 %v2373_v10, %v2372_v8  ;;  %v2322_v24 = vld [vmem:[%s3373_s2] ss:$0 sm:$0xff]  ;;  %v2323_v28 = vld [vmem:[%s3373_s2 + $0x1] ss:$0 sm:$0xff]  ;;  %v2352_v33 = vld [vmem:[%s3373_s2 + $0x6] ss:$0 sm:$0xff]  ;;  %p2820_p13 = pneg %p2819_p12  ;;  %p2826_p2 = por %p2825_p1, %p2824_p0 }
  0x1f   : > { %2702 = vmatpush3.bf16.msra.mxu0 %v2701_v25  ;;  %2708 = vmatpush3.bf16.msra.mxu1 %v2707_v26  ;;  %v2353_v34 = vld [vmem:[%s3373_s2 + $0x7] ss:$0 sm:$0xff]  ;;  %v2324_v36 = vld [vmem:[%s3373_s2 + $0x2] ss:$0 sm:$0xff]  ;;  %v2325_v40 = vld [vmem:[%s3373_s2 + $0x3] ss:$0 sm:$0xff] }
  0x20   : > { %2709 = vmatprep.subr.bf16.mxu0 %v2881_v3  ;;  %2715 = vmatprep.subr.bf16.mxu1 %v2881_v3  ;;  %v2378_v45 = vld [vmem:[%s3373_s2 + $0x8] ss:$0 sm:$0xff]  ;;  %v2379_v46 = vld [vmem:[%s3373_s2 + $0x9] ss:$0 sm:$0xff]  ;;  %p2827_p3 = pnand %p2826_p2, %p2820_p13 }
  0x22   : > { %2524 = vmatmul.mubr.msk.f32.vlgmr.msra.gmra.mrb[2].mxu0 %vm319_vm1, %v3022_v18  ;;  %2535 = vmatmul.mubr.msk.f32.vlgmr.msra.gmra.mrb[2].mxu1 %vm319_vm1, %v3022_v18 }
  0x23   : > { %2711 = vmatpush3.bf16.msra.mxu0 %v2710_v31  ;;  %2717 = vmatpush3.bf16.msra.mxu1 %v2716_v32 }
  0x24   : > { %2712 = vmatprep.subr.bf16.mxu0 %v2881_v3  ;;  %2718 = vmatprep.subr.bf16.mxu1 %v2881_v3 }
  0x25   : > { %2545 = vmatprep.mubr.msk.f32.mxu0 %vm2882_vm0, %v2883_v11  ;;  %2556 = vmatprep.mubr.msk.f32.mxu1 %vm2882_vm0, %v2883_v11 }
  0x27   : > { %2714 = vmatpush3.bf16.msra.mxu0 %v2713_v37  ;;  %2720 = vmatpush3.bf16.msra.mxu1 %v2719_v38 }
  0x28   : > { %2721 = vmatprep.subr.bf16.mxu0 %v2881_v3  ;;  %2727 = vmatprep.subr.bf16.mxu1 %v2881_v3 }
  0x2a   : > { %2546 = vmatmul.mubr.msk.f32.vlgmr.msra.gmra.mrb[4].mxu0 %vm319_vm1, %v3022_v18  ;;  %2557 = vmatmul.mubr.msk.f32.vlgmr.msra.gmra.mrb[4].mxu1 %vm319_vm1, %v3022_v18 }
  0x2b   : > { %2723 = vmatpush3.bf16.msra.mxu0 %v2722_v43  ;;  %2729 = vmatpush3.bf16.msra.mxu1 %v2728_v44 }
  0x2c   : > { %2724 = vmatprep.subr.bf16.mxu0 %v2881_v3  ;;  %2730 = vmatprep.subr.bf16.mxu1 %v2881_v3 }
  0x2d   : > { %2567 = vmatprep.mubr.msk.f32.mxu0 %vm2882_vm0, %v2883_v11  ;;  %2578 = vmatprep.mubr.msk.f32.mxu1 %vm2882_vm0, %v2883_v11 }
  0x2f   : > { %2726 = vmatpush3.bf16.msra.mxu0 %v2725_v49  ;;  %2732 = vmatpush3.bf16.msra.mxu1 %v2731_v50 }
  0x30   : > { %2733 = vmatprep.subr.bf16.mxu0 %v2881_v3  ;;  %2739 = vmatprep.subr.bf16.mxu1 %v2881_v3 }
  0x32   : > { %2568 = vmatmul.mubr.msk.f32.vlgmr.msra.gmra.mrb[6].mxu0 %vm319_vm1, %v3022_v18  ;;  %2579 = vmatmul.mubr.msk.f32.vlgmr.msra.gmra.mrb[6].mxu1 %vm319_vm1, %v3022_v18 }
  0x33   : > { %2735 = vmatpush3.bf16.msra.mxu0 %v2734_v55  ;;  %2741 = vmatpush3.bf16.msra.mxu1 %v2740_v56 }
  0x34   : > { %2736 = vmatprep.subr.bf16.mxu0 %v2881_v3  ;;  %2742 = vmatprep.subr.bf16.mxu1 %v2881_v3 }
  0x35   : > { %2589 = vmatprep.mubr.msk.f32.mxu0 %vm2882_vm0, %v2883_v11  ;;  %2600 = vmatprep.mubr.msk.f32.mxu1 %vm2882_vm0, %v2883_v11 }
  0x37   : > { %2738 = vmatpush3.bf16.msra.mxu0 %v2737_v60  ;;  %2744 = vmatpush3.bf16.msra.mxu1 %v2743_v62 }
  0x38   : > { %2745 = vmatprep.subr.bf16.mxu0 %v2881_v3  ;;  %2751 = vmatprep.subr.bf16.mxu1 %v2881_v3 }
  0x3a   : > { %2590 = vmatmul.mubr.msk.f32.vlgmr.msra.gmra.mrb[8].mxu0 %vm319_vm1, %v3022_v18  ;;  %2601 = vmatmul.mubr.msk.f32.vlgmr.msra.gmra.mrb[8].mxu1 %vm319_vm1, %v3022_v18 }
  0x3b   : > { %2747 = vmatpush3.bf16.msra.mxu0 %v2746_v2  ;;  %2753 = vmatpush3.bf16.msra.mxu1 %v2752_v5 }
  0x3c   : > { %2748 = vmatprep.subr.bf16.mxu0 %v2881_v3  ;;  %2754 = vmatprep.subr.bf16.mxu1 %v2881_v3 }
  0x3d   : > { %2611 = vmatprep.mubr.msk.f32.mxu0 %vm2882_vm0, %v2883_v11  ;;  %2622 = vmatprep.mubr.msk.f32.mxu1 %vm2882_vm0, %v2883_v11 }
  0x3f   : > { %2750 = vmatpush3.bf16.msra.mxu0 %v2749_v9  ;;  %2756 = vmatpush3.bf16.msra.mxu1 %v2755_v12 }
  0x40   : > { %2625 = vmatprep.subr.mxu0 %v2883_v11  ;;  %2630 = vmatprep.subr.mxu1 %v2883_v11 }
  0x42   : > { %2612 = vmatmul.mubr.msk.f32.vlgmr.msra.gmra.mrb[10].mxu0 %vm319_vm1, %v3022_v18  ;;  %2623 = vmatmul.mubr.msk.f32.vlgmr.msra.gmra.mrb[10].mxu1 %vm319_vm1, %v3022_v18 }
  0x43   : > { %2627 = vmatprep.mubr.msk.f32.mxu0 %vm2882_vm0, %v2883_v11  ;;  %2632 = vmatprep.mubr.msk.f32.mxu1 %vm2882_vm0, %v2883_v11 }
  0xed   : > { %v389_v3 = vpop.f32.mrb[0].mxu0  ;;  %v459_v14 = vpop.f32.mrb[0].mxu1 }
  0xee   : > { %v2503_v13 = vpop.f32.mrb[1].mxu0  ;;  %v2514_v15 = vpop.f32.mrb[1].mxu1  ;;  %v390_v31 = vadd.f32 %v2322_v24, %v389_v3  ;;  %v460_v32 = vadd.f32 %v2323_v28, %v459_v14 }
  0xf5   : > { %v529_v16 = vpop.f32.mrb[2].mxu0  ;;  %v599_v19 = vpop.f32.mrb[2].mxu1 }
  0xf6   : > { %v2525_v17 = vpop.f32.mrb[3].mxu0  ;;  %v2536_v20 = vpop.f32.mrb[3].mxu1  ;;  %v530_v43 = vadd.f32 %v2324_v36, %v529_v16  ;;  %v600_v44 = vadd.f32 %v2325_v40, %v599_v19 }
  0xfd   : > { %v715_v23 = vpop.f32.mrb[4].mxu0  ;;  %v785_v26 = vpop.f32.mrb[4].mxu1 }
  0xfe   : > { %v716_v25 = vadd.f32 %v2350_v21, %v715_v23  ;;  %v2547_v27 = vpop.f32.mrb[5].mxu0  ;;  %v786_v29 = vadd.f32 %v2351_v22, %v785_v26  ;;  %v2558_v30 = vpop.f32.mrb[5].mxu1 }
 0x100   : > { %2626 = vmatpush3.xpose.msk.msra.mxu0 %vm1255_vm2, %v716_v25  ;;  %2631 = vmatpush3.xpose.msk.msra.mxu1 %vm1255_vm2, %v786_v29 }
 0x101   : > { %2635 = vmatprep.subr.mxu0 %v2883_v11  ;;  %2640 = vmatprep.subr.mxu1 %v2883_v11 }
 0x103   : > { %2628 = vmatmul.mubr.msk.f32.vlgmr.msra.gmra.mrb[12].mxu0 %vm1255_vm2, %v390_v31  ;;  %2633 = vmatmul.mubr.msk.f32.vlgmr.msra.gmra.mrb[12].mxu1 %vm1255_vm2, %v460_v32 }
 0x104   : > { %2637 = vmatprep.mubr.msk.f32.mxu0 %vm2882_vm0, %v2883_v11  ;;  %2642 = vmatprep.mubr.msk.f32.mxu1 %vm2882_vm0, %v2883_v11 }
 0x105   : > { %v855_v35 = vpop.f32.mrb[6].mxu0  ;;  %v925_v38 = vpop.f32.mrb[6].mxu1 }
 0x106   : > { %v856_v37 = vadd.f32 %v2352_v33, %v855_v35  ;;  %v2569_v39 = vpop.f32.mrb[7].mxu0  ;;  %v926_v41 = vadd.f32 %v2353_v34, %v925_v38  ;;  %v2580_v42 = vpop.f32.mrb[7].mxu1  ;;  %v2380_v34 = vld [vmem:[%s3373_s2 + $0xa] ss:$0 sm:$0xff] }
 0x107   : > { %v2381_v39 = vld [vmem:[%s3373_s2 + $0xb] ss:$0 sm:$0xff] }
 0x108   : > { %2636 = vmatpush3.xpose.msk.msra.mxu0 %vm1255_vm2, %v856_v37  ;;  %2641 = vmatpush3.xpose.msk.msra.mxu1 %vm1255_vm2, %v926_v41 }
 0x109   : > { %2645 = vmatprep.subr.mxu0 %v2883_v11  ;;  %2650 = vmatprep.subr.mxu1 %v2883_v11 }
 0x10b   : > { %2638 = vmatmul.mubr.msk.f32.vlgmr.msra.gmra.mrb[14].mxu0 %vm1255_vm2, %v530_v43  ;;  %2643 = vmatmul.mubr.msk.f32.vlgmr.msra.gmra.mrb[14].mxu1 %vm1255_vm2, %v600_v44 }
 0x10c   : > { %2647 = vmatprep.mubr.msk.f32.mxu0 %vm2882_vm0, %v2883_v11  ;;  %2652 = vmatprep.mubr.msk.f32.mxu1 %vm2882_vm0, %v2883_v11 }
 0x10d   : > { %v1041_v47 = vpop.f32.mrb[8].mxu0  ;;  %v1111_v50 = vpop.f32.mrb[8].mxu1 }
 0x10e   : > { %v1042_v48 = vadd.f32 %v2378_v45, %v1041_v47  ;;  %v2591_v49 = vpop.f32.mrb[9].mxu0  ;;  %v1112_v51 = vadd.f32 %v2379_v46, %v1111_v50  ;;  %v2602_v52 = vpop.f32.mrb[9].mxu1  ;;  %v1900_v47 = vld [vmem:[%s3374_s3] sm:$0xff] }
 0x10f   : > { %v1902_v49 = vld [vmem:[%s3374_s3 + $0x10] sm:$0xff]  ;;  %v1903_v52 = vld [vmem:[%s3374_s3 + $0x18] sm:$0xff] }
 0x110   : > { %2646 = vmatpush3.msra.mxu0 %v1042_v48  ;;  %2651 = vmatpush3.msra.mxu1 %v1112_v51  ;;  %v1901_v48 = vld [vmem:[%s3374_s3 + $0x8] sm:$0xff] }
 0x111   : > { %2655 = vmatprep.subr.mxu0 %v2883_v11  ;;  %2660 = vmatprep.subr.mxu1 %v2883_v11 }
 0x115   : > { %v1181_v53 = vpop.f32.mrb[10].mxu0  ;;  %v3254_v54 = vpop.f32.mrb[10].mxu1 }
 0x116   : > { %v2613_v55 = vpop.f32.mrb[11].mxu0  ;;  %v2624_v56 = vpop.f32.mrb[11].mxu1  ;;  %v1182_v38 = vadd.f32 %v2380_v34, %v1181_v53  ;;  %v1252_v42 = vadd.f32 %v2381_v39, %v3254_v54 }
 0x1d6   : > { %v1328_v57 = vpop.f32.mrb[12].mxu0  ;;  %v1404_v59 = vpop.f32.mrb[12].mxu1 }
 0x1d7   : > { %v1560_v58 = vmul.f32 0.35355338, %v1328_v57  ;;  %v2629_v60 = vpop.f32.mrb[13].mxu0  ;;  %v2634_v61 = vpop.f32.mrb[13].mxu1  ;;  %v1561_v62 = vmul.f32 0.35355338, %v1404_v59 }
 0x1d9   : > { %v1564_v63 = vsel %vm1255_vm2, %v1560_v58, -inf  ;;  %v1567_v0 = vsel %vm1255_vm2, %v1561_v62, -inf }
 0x1da   : > { %1565 = vmax.xlane.f32.xlu0 %v1564_v63 }
 0x1de   : > { %1568 = vmax.xlane.f32.xlu0 %v1567_v0  ;;  %v1480_v1 = vpop.f32.mrb[14].mxu0  ;;  %v1556_v2 = vpop.f32.mrb[14].mxu1 }
 0x1df   : > { %v1562_v4 = vmul.f32 0.35355338, %v1480_v1  ;;  %v2639_v5 = vpop.f32.mrb[15].mxu0  ;;  %v2644_v6 = vpop.f32.mrb[15].mxu1  ;;  %v1563_v7 = vmul.f32 0.35355338, %v1556_v2 }
 0x1e1   : > { %v1570_v8 = vsel %vm1255_vm2, %v1562_v4, -inf  ;;  %v1573_v9 = vsel %vm1255_vm2, %v1563_v7, -inf }
 0x1e2   : > { %1571 = vmax.xlane.f32.xlu1 %v1570_v8  ;;  %v2402_v8 = vld [vmem:[%s3375_s4] ss:$0 sm:$0xff] }
 0x1e6   : > { %1574 = vmax.xlane.f32.xlu1 %v1573_v9 }
 0x267   : > { %v1566_v10 = vpop.xlane.xlu0 %1565 }
 0x268   : > { %v1576_v12 = vsub.f32 %v1560_v58, %v1566_v10 }
 0x26a   : > { %v1580_v3 = vmul.f32 1.442695, %v1576_v12 }
 0x26b   : > { %v1569_v13 = vpop.xlane.xlu0 %1568 }
 0x26c   : > { %2799 = vpow2.f32 %v1580_v3  ;;  %v1577_v14 = vsub.f32 %v1561_v62, %v1569_v13 }
 0x26e   : > { %v1582_v15 = vmul.f32 1.442695, %v1577_v14 }
 0x26f   : > { %v1572_v16 = vpop.xlane.xlu1 %1571 }
 0x270   : > { %2801 = vpow2.f32 %v1582_v15  ;;  %v1578_v17 = vsub.f32 %v1562_v4, %v1572_v16 }
 0x272   : > { %v1584_v19 = vmul.f32 1.442695, %v1578_v17 }
 0x273   : > { %v1575_v20 = vpop.xlane.xlu1 %1574 }
 0x274   : > { %2803 = vpow2.f32 %v1584_v19  ;;  %v1579_v21 = vsub.f32 %v1563_v7, %v1575_v20 }
 0x276   : > { %v2800_v22 = vpop.eup %2799  ;;  %v1586_v23 = vmul.f32 1.442695, %v1579_v21 }
 0x277   : > { %v1588_v24 = vsel %vm1255_vm2, %v2800_v22, 0.0 }
 0x278   : > { %2805 = vpow2.f32 %v1586_v23  ;;  %1589 = vadd.xlane.f32.xlu0 %v1588_v24 }
 0x27a   : > { %v2802_v25 = vpop.eup %2801 }
 0x27b   : > { %v1591_v26 = vsel %vm1255_vm2, %v2802_v25, 0.0 }
 0x27c   : > { %1592 = vadd.xlane.f32.xlu1 %v1591_v26 }
 0x27e   : > { %v2804_v27 = vpop.eup %2803 }
 0x27f   : > { %v1594_v28 = vsel %vm1255_vm2, %v2804_v27, 0.0 }
 0x280   : > { %1595 = vadd.xlane.f32.xlu0 %v1594_v28 }
 0x282   : > { %v2806_v29 = vpop.eup %2805 }
 0x283   : > { %v1597_v30 = vsel %vm1255_vm2, %v2806_v29, 0.0 }
 0x284   : > { %1598 = vadd.xlane.f32.xlu1 %v1597_v30 }
 0x305   : > { %v1590_v31 = vpop.xlane.xlu0 %1589 }
 0x306   : > { %2807 = vrcp.f32 %v1590_v31 }
 0x309   : > { %v1593_v32 = vpop.xlane.xlu1 %1592 }
 0x30a   : > { %2809 = vrcp.f32 %v1593_v32 }
 0x30d   : > { %v1596_v33 = vpop.xlane.xlu0 %1595 }
 0x30e   : > { %2811 = vrcp.f32 %v1596_v33 }
 0x310   : > { %v2808_v35 = vpop.eup %2807 }
 0x311   : > { %v1604_v36 = vmul.f32 %v2808_v35, %v2800_v22  ;;  %v1599_v37 = vpop.xlane.xlu1 %1598 }
 0x312   : > { %2813 = vrcp.f32 %v1599_v37 }
 0x313   : > { %2648 = vmatmul.mubr.msk.f32.vlgmr.msra.gmra.mrb[16].mxu0 %vm1255_vm2, %v1604_v36 }
 0x314   : > { %v2810_v40 = vpop.eup %2809  ;;  %2656 = vmatpush3.msra.mxu0 %v1182_v38  ;;  %2657 = vmatprep.mubr.msk.f32.mxu0 %vm2882_vm0, %v2883_v11 }
 0x315   : > { %v1605_v41 = vmul.f32 %v2810_v40, %v2802_v25  ;;  %2665 = vmatprep.subr.mxu0 %v2883_v11  ;;  %v2404_v25 = vld [vmem:[%s3377_s6] ss:$0 sm:$0xff] }
 0x317   : > { %2653 = vmatmul.mubr.msk.f32.vlgmr.msra.gmra.mrb[16].mxu1 %vm1255_vm2, %v1605_v41 }
 0x318   : > { %v2812_v43 = vpop.eup %2811  ;;  %2661 = vmatpush3.msra.mxu1 %v1252_v42  ;;  %2662 = vmatprep.mubr.msk.f32.mxu1 %vm2882_vm0, %v2883_v11 }
 0x319   : > { %v1606_v44 = vmul.f32 %v2812_v43, %v2804_v27  ;;  %2670 = vmatprep.subr.mxu1 %v2883_v11 }
 0x31b   : > { %2658 = vmatmul.mubr.msk.f32.vlgmr.msra.gmra.mrb[18].mxu0 %vm1255_vm2, %v1606_v44 }
 0x31c   : > { %v2814_v45 = vpop.eup %2813  ;;  %2667 = vmatprep.mubr.msk.f32.mxu0 %vm2882_vm0, %v2883_v11  ;;  %2666 = vmatpush3.msra.mxu0 %v1900_v47 }
 0x31d   : > { %v1607_v46 = vmul.f32 %v2814_v45, %v2806_v29  ;;  %2675 = vmatprep.subr.mxu0 %v2883_v11 }
 0x31f   : > { %2663 = vmatmul.mubr.msk.f32.vlgmr.msra.gmra.mrb[18].mxu1 %vm1255_vm2, %v1607_v46 }
 0x320   : > { %2672 = vmatprep.mubr.msk.f32.mxu1 %vm2882_vm0, %v2883_v11  ;;  %2671 = vmatpush3.msra.mxu1 %v1901_v48 }
 0x321   : > { %2680 = vmatprep.subr.mxu1 %v2883_v11 }
 0x3e6   : > { %v1677_v50 = vpop.f32.mrb[16].mxu0 }
 0x3e7   : > { %v2649_v51 = vpop.f32.mrb[17].mxu0  ;;  %2668 = vmatmul.mubr.msk.f32.vlgmr.msra.gmra.mrb[20].mxu0 %vm1255_vm2, %v1677_v50 }
 0x3e8   : > { %2676 = vmatpush3.msra.mxu0 %v1902_v49  ;;  %2677 = vmatprep.mubr.msk.f32.mxu0 %vm2882_vm0, %v2883_v11 }
 0x3ea   : > { %v1750_v53 = vpop.f32.mrb[16].mxu1 }
 0x3eb   : > { %v2654_v54 = vpop.f32.mrb[17].mxu1  ;;  %2673 = vmatmul.mubr.msk.f32.vlgmr.msra.gmra.mrb[20].mxu1 %vm1255_vm2, %v1750_v53 }
 0x3ec   : > { %2681 = vmatpush3.msra.mxu1 %v1903_v52  ;;  %2682 = vmatprep.mubr.msk.f32.mxu1 %vm2882_vm0, %v2883_v11 }
 0x3ee   : > { %v1823_v55 = vpop.f32.mrb[18].mxu0 }
 0x3ef   : > { %v2659_v56 = vpop.f32.mrb[19].mxu0  ;;  %2678 = vmatmul.mubr.msk.f32.vlgmr.msra.gmra.mrb[22].mxu0 %vm1255_vm2, %v1823_v55 }
 0x3f2   : > { %v1896_v57 = vpop.f32.mrb[18].mxu1 }
 0x3f3   : > { %v2664_v58 = vpop.f32.mrb[19].mxu1  ;;  %2683 = vmatmul.mubr.msk.f32.vlgmr.msra.gmra.mrb[22].mxu1 %vm1255_vm2, %v1896_v57 }
 0x4ba   : > { %v1973_v59 = vpop.f32.mrb[20].mxu0 }
 0x4bb   : > { %v2669_v60 = vpop.f32.mrb[21].mxu0  ;;  %v2196_v62 = vsel %vm319_vm1, %v1973_v59, 0.0 }
 0x4be   : > { %v2046_v61 = vpop.f32.mrb[20].mxu1 }
 0x4bf   : > { %v2197_v63 = vsel %vm319_vm1, %v2046_v61, 0.0  ;;  %v2674_v0 = vpop.f32.mrb[21].mxu1 }
 0x4c0   : > { %v2198_v1 = vadd.f32 %v2197_v63, %v2196_v62 }
 0x4c2   : > { %v2119_v2 = vpop.f32.mrb[22].mxu0 }
 0x4c3   : > { %v2199_v11 = vsel %vm319_vm1, %v2119_v2, 0.0  ;;  %v2679_v4 = vpop.f32.mrb[23].mxu0 }
 0x4c4   : > { %v2200_v5 = vadd.f32 %v2199_v11, %v2198_v1 }
 0x4c6   : > { %v2192_v6 = vpop.f32.mrb[22].mxu1 }
 0x4c7   : > { %v2201_v7 = vsel %vm319_vm1, %v2192_v6, 0.0  ;;  %v2684_v9 = vpop.f32.mrb[23].mxu1 }
 0x4c8   : > { %v2202_v10 = vadd.f32 %v2201_v7, %v2200_v5 }
 0x4ca   : > { %v2210_v12 = vadd.f32 %v2402_v8, %v2202_v10 }
 0x4cc   : > { %v2211_v3 = vadd.f32 %v2210_v12, %v3022_v18  ;;  %v2403_v18 = vld [vmem:[%s3376_s5] ss:$0 sm:$0xff] }
 0x4ce   : > { %v2212_v13 = vsel %vm319_vm1, %v2211_v3, 0.0 }
 0x4cf   : > { %2213 = vadd.xlane.f32.xlu0 %v2212_v13 }
 0x55c   : > { %v2214_v14 = vpop.xlane.xlu0 %2213 }
 0x55d   : > { %v2216_v15 = vmul.f32 0.03125, %v2214_v14 }
 0x55f   : > { %v2217_v16 = vsub.f32 %v2211_v3, %v2216_v15 }
 0x561   : > { %v2218_v17 = vmul.f32 %v2217_v16, %v2217_v16 }
 0x563   : > { %v2219_v19 = vsel %vm319_vm1, %v2218_v17, 0.0 }
 0x564   : > { %2220 = vadd.xlane.f32.xlu1 %v2219_v19 }
 0x5f1   : > { %v2221_v20 = vpop.xlane.xlu1 %2220 }
 0x5f2   : > { %v2222_v21 = vmul.f32 0.03125, %v2221_v20 }
 0x5f4   : > { %v2223_v22 = vadd.f32 1e-05, %v2222_v21 }
 0x5f6   : > { %2815 = vrsqrt.f32 %v2223_v22 }
 0x600   : > { %v2816_v23 = vpop.eup %2815 }
 0x601   : > { %v2225_v24 = vmul.f32 %v2816_v23, %v2217_v16 }
 0x603   : > { %v2233_v26 = vmul.f32 %v2403_v18, %v2225_v24 }
 0x605   : > { %v2241_v27 = vadd.f32 %v2404_v25, %v2233_v26 }
 0x607   : > { %2242 = vst.msk [vmem:[%s269_s15] sm:$0xff] %vm319_vm1, %v2241_v27 }
 0x608   : > { %2830 = shalt.err (!%p2827_p3)
}
 0x609   : > { %s2831_s22 = scalar_lea.hbm %s3328_s19, 128  ;;  %s2835_s13 = scalar_lea.hbm %s3378_s7, 256 }
 0x60a   : > { %p2832_p4 = scmp.ne.s32.totalorder %s3328_s19, %s2831_s22  ;;  %p2836_p9 = scmp.lt.u32.totalorder %s3328_s19, %s3378_s7 }
 0x60b   : > { %p2837_p10 = scmp.lt.u32.totalorder %s2835_s13, %s2831_s22  ;;  %p2839_p12 = scmp.lt.u32.totalorder %s2831_s22, %s3328_s19 }
 0x60c   : > { %p2833_p7 = pnand %p2832_p4, %p2963_p5 }
 0x60d   : > { %p2838_p11 = por %p2837_p10, %p2836_p9 }
 0x60e   : > { %p2834_p8 = pneg %p2833_p7 }
 0x60f   : > { %p2840_p13 = por %p2839_p12, %p2838_p11 }
 0x611   : > { %p2841_p0 = pnand %p2840_p13, %p2834_p8 }
 0x613   : > { %2844 = shalt.err (!%p2841_p0)
}
 0x614   : > { %2757 = dma.vmem_to_hbm [thread:$0]  (%p2963_p5), %s3330_s16, 128, %s3328_s19, %s2244_s20  }
 0x615 PF: > { %p2763_p1 = scmp.ge.s32.totalorder %s2879_s27, 2  ;;  %s2269_s17 = sand.u32 1, %s2867_s24  }
 0x616   : > { %s2270_s18 = scalar_lea.sflag [#allocation3], %s2269_s17 }
 0x617   : > { %p2760_p2 = pnand %p2763_p1, %p2967_p6 }
 0x619   : > { %2862 = dma.done.wait (!%p2760_p2), %s2270_s18, 128  }
 0x61a   : > { %2864 = vsyncadd (!%p2760_p2), %s2270_s18, 4294967168  ;;  %p17_p3 = scmp.ge.s32.totalorder %s2950_s30, 4   ;;  %s3381_s24 = smov %s2871_s25 }
 0x61b   : > { %s3382_s25 = smov %s2875_s26  ;;  %s3383_s26 = smov %s2961_s10 }
 0x61c   : > { %s3384_s27 = smov %s2950_s30  ;;  %19 = sbr.rel (!%p17_p3) target bundleno = 3 (0x3), region = 87 }
 0x623   :  { %2275 = vsyncpa [#allocation3], 1 }
 0x624   :  { %2277 = vsyncpa [#allocation3 + $0x1], 1 }

</bundles_post_ra>
